<compile_context>
chip_gen: v7x
topology: tpu7x:2x2x1
jax: 0.10.0
libtpu: 0.0.40
codegen_flags: <defaults>
</compile_context>

<pallas_src>
import jax
import jax.numpy as jnp
from jax.experimental import pallas as pl
from jax.experimental.pallas import tpu as pltpu

BN_EPS = 1e-5
N_ALIGN = 256          # full MXU tile width on v6e/v7x; 128-aligned so fine on v5e
SUBLANE = 8
NEG_FILL = -1e30       # poison for padded class columns (safe for argmax/softmax)


def _round_up(x, m):
    return ((x + m - 1) // m) * m


# ----------------------------------------------------------------------------
# Kernel: one fused matmul + bias per batch tile.
# ----------------------------------------------------------------------------
def _fused_head_kernel(x_ref, w_ref, b_ref, o_ref):
    # x: [tile_B, D]   w: [D, N_pad] bf16   b: [1, N_pad] f32   o: [tile_B, N_pad] f32
    x = x_ref[...]
    if x.dtype != jnp.bfloat16:
        x = x.astype(jnp.bfloat16)               # cheap VPU cast; MXU bf16 path
    y = jnp.dot(x, w_ref[...], preferred_element_type=jnp.float32)
    o_ref[...] = (y + b_ref[...]).astype(o_ref.dtype)


# ----------------------------------------------------------------------------
# One-time parameter fusion (outside the per-call path).
#   branch(x) = ((x - m) * g * rsqrt(v+eps) + beta) @ W^T + b
#             = x @ (W^T * s[:,None]) + (W @ (beta - m*s) + b),  s = g*rsqrt(v+eps)
#   final     = 0.5 * (branch1 + branch2)
# ----------------------------------------------------------------------------
def fuse_classifier_params(params1, params2):
    def fold(p):
        s = p["bn_gamma"] * jax.lax.rsqrt(p["bn_var"] + BN_EPS)          # [D]
        w_eff = p["w"].T * s[:, None]                                    # [D, N]
        b_eff = p["w"] @ (p["bn_beta"] - p["bn_mean"] * s) + p["b"]      # [N]
        return w_eff, b_eff

    w1, b1 = fold(params1)
    w2, b2 = fold(params2)
    w_eff = 0.5 * (w1 + w2)
    b_eff = 0.5 * (b1 + b2)

    D, N = w_eff.shape
    n_pad = _round_up(N, N_ALIGN)
    w_eff = jnp.pad(w_eff, ((0, 0), (0, n_pad - N))).astype(jnp.bfloat16)
    # Padded class columns carry a huge negative bias so the padded-width logits
    # can be fed straight to softmax/argmax without the post-call slice.
    pad_bias = jnp.full((n_pad - N,), NEG_FILL, dtype=jnp.float32)
    b_eff = jnp.concatenate([b_eff.astype(jnp.float32), pad_bias]).reshape(1, n_pad)
    return w_eff, b_eff, N


# ----------------------------------------------------------------------------
# Batch-tile selection: VMEM-budgeted, >=2 grid steps when possible.
# ----------------------------------------------------------------------------
def _pick_tile_b(B, D, n_pad, x_itemsize, out_itemsize):
    # Conservative working-set budget (fits v5e's 16 MiB default scoped VMEM):
    #   single-buffered weights/bias + double-buffered x / out tiles.
    budget = 14 << 20
    const_bytes = D * n_pad * 2 + n_pad * 4
    per_row = 2 * (D * x_itemsize + n_pad * out_itemsize)
    cap = (budget - const_bytes) // max(per_row, 1)
    cap = max(SUBLANE, min(cap, 1024))

    if B <= SUBLANE:
        return B                      # block == full array; (8,128) rule satisfied
    # Keep at least 2 grid steps so both v7x TensorCores get work when B allows.
    tile = min(cap, _round_up(pl.cdiv(B, 2), SUBLANE))
    tile = max(SUBLANE, (tile // SUBLANE) * SUBLANE)
    return min(tile, _round_up(B, SUBLANE))


# ----------------------------------------------------------------------------
# Wrapper: batch-tiled pallas_call (no explicit batch pad; partial last block).
# ----------------------------------------------------------------------------
def classifier_forward(x, w_eff, b_eff, num_classes, *, return_padded=False):
    """x: [B, D] (f32 or bf16).  w_eff: [D, N_pad] bf16.  b_eff: [1, N_pad] f32."""
    B, D = x.shape
    n_pad = w_eff.shape[1]

    tile_b = _pick_tile_b(B, D, n_pad, x.dtype.itemsize, 4)
    grid = (pl.cdiv(B, tile_b),)

    cost = pl.CostEstimate(
        flops=2 * B * D * n_pad,
        transcendentals=0,
        bytes_accessed=(B * D * x.dtype.itemsize   # x
                        + D * n_pad * 2            # bf16 weights
                        + n_pad * 4                # bias
                        + B * n_pad * 4),          # output
    )

    out = pl.pallas_call(
        _fused_head_kernel,
        out_shape=jax.ShapeDtypeStruct((B, n_pad), jnp.float32),
        grid_spec=pltpu.PrefetchScalarGridSpec(
            num_scalar_prefetch=0,
            grid=grid,
            in_specs=[
                # x batch tile: double-buffered by default (streams with the grid)
                pl.BlockSpec((tile_b, D), lambda i: (i, 0)),
                # Constant blocks: single-buffered (index_map is constant, so
                # double-buffering would only double their VMEM footprint).
                pl.BlockSpec((D, n_pad), lambda i: (0, 0),
                             pipeline_mode=pl.Buffered(1)),
                pl.BlockSpec((1, n_pad), lambda i: (0, 0),
                             pipeline_mode=pl.Buffered(1)),
            ],
            out_specs=pl.BlockSpec((tile_b, n_pad), lambda i: (i, 0)),
        ),
        compiler_params=pltpu.CompilerParams(
            dimension_semantics=("parallel",),
            vmem_limit_bytes=32 << 20,   # raises v5e's 16 MiB default; no-op on v6e/v7x
        ),
        cost_estimate=cost,
    )(x, w_eff, b_eff)

    if return_padded:
        # Padded columns hold NEG_FILL logits -> safe for downstream softmax/argmax.
        return out
    return out[:, :num_classes]


# ----------------------------------------------------------------------------
# Test harness
# ----------------------------------------------------------------------------
def _make_bn_linear_params(key, dim, num_classes):
    k1, k2, k3, k4, k5 = jax.random.split(key, 5)
    # trunc_normal_(std=0.02) ~ normal clipped to 2 std
    w = jnp.clip(jax.random.normal(k1, (num_classes, dim)) * 0.02, -0.04, 0.04)
    b = jnp.zeros((num_classes,), jnp.float32)               # constant_(bias, 0)
    # BatchNorm1d running stats / affine, perturbed so the BN path is exercised.
    bn_gamma = 1.0 + 0.1 * jax.random.normal(k2, (dim,))
    bn_beta = 0.1 * jax.random.normal(k3, (dim,))
    bn_mean = 0.05 * jax.random.normal(k4, (dim,))
    bn_var = jnp.abs(1.0 + 0.1 * jax.random.normal(k5, (dim,)))
    return {"w": w.astype(jnp.float32), "b": b,
            "bn_gamma": bn_gamma.astype(jnp.float32),
            "bn_beta": bn_beta.astype(jnp.float32),
            "bn_mean": bn_mean.astype(jnp.float32),
            "bn_var": bn_var.astype(jnp.float32)}


def _reference(x, p1, p2):
    def branch(p):
        xn = (x - p["bn_mean"]) * p["bn_gamma"] / jnp.sqrt(p["bn_var"] + BN_EPS) + p["bn_beta"]
        return xn @ p["w"].T + p["b"]
    return (branch(p1) + branch(p2)) * 0.5


if __name__ == "__main__":
    key = jax.random.PRNGKey(0)
    kx, kp1, kp2 = jax.random.split(key, 3)

    B, DIM, NUM_CLASSES = 8, 32, 16
    x = jax.random.normal(kx, (B, DIM), jnp.float32)

    params1 = _make_bn_linear_params(kp1, DIM, NUM_CLASSES)   # classifier
    params2 = _make_bn_linear_params(kp2, DIM, NUM_CLASSES)   # classifier_dist

    # One-time fold (inference constants) — outside the per-call path.
    w_eff, b_eff, n_out = fuse_classifier_params(params1, params2)

    out = classifier_forward(x, w_eff, b_eff, n_out)
    out = jax.block_until_ready(out)

    ref = _reference(x, params1, params2)
    assert out.shape == (B, NUM_CLASSES)
    # bf16 MXU inputs (x and folded weights) -> tolerance consistent with bf16
    # rounding; accumulation is f32.
    assert jnp.allclose(out, ref, atol=5e-3, rtol=1e-2), "mismatch vs reference"

    print("KERNEL_OK")
</pallas_src>

<mosaic_0001>
module attributes {stable_mosaic.version = 11 : i64} {
  func.func @_fused_head_kernel(%arg0: i32, %arg1: memref<8x32xf32, #tpu.memory_space<vmem>>, %arg2: memref<32x256xbf16, #tpu.memory_space<vmem>>, %arg3: memref<1x256xf32, #tpu.memory_space<vmem>>, %arg4: memref<8x256xf32, #tpu.memory_space<vmem>>) attributes {dimension_semantics = [#tpu.dimension_semantics<parallel>], iteration_bounds = array<i64: 1>, scalar_prefetch = 0 : i64, scratch_operands = 0 : i64, tpu.core_type = #tpu.core_type<tc>, window_params = [{transform_indices = @transform_0, window_bounds = array<i64: 8, 32>}, {pipeline_mode = #tpu.pipeline_mode<synchronous>, transform_indices = @transform_1, window_bounds = array<i64: 32, 256>}, {pipeline_mode = #tpu.pipeline_mode<synchronous>, transform_indices = @transform_2, window_bounds = array<i64: 1, 256>}, {transform_indices = @transform_3, window_bounds = array<i64: 8, 256>}]} {
    %c0 = arith.constant 0 : index
    %c0_0 = arith.constant 0 : index
    %0 = vector.load %arg1[%c0, %c0_0] : memref<8x32xf32, #tpu.memory_space<vmem>>, vector<8x32xf32>
    %1 = arith.truncf %0 : vector<8x32xf32> to vector<8x32xbf16>
    %c0_1 = arith.constant 0 : index
    %c0_2 = arith.constant 0 : index
    %2 = vector.load %arg2[%c0_1, %c0_2] : memref<32x256xbf16, #tpu.memory_space<vmem>>, vector<32x256xbf16>
    %cst = arith.constant dense<0.000000e+00> : vector<8x256xf32>
    %3 = tpu.matmul %1, %2, %cst {dimension_numbers = #tpu.dot_dimension_numbers<[1], [0], [0], [1], [0, 0, 1, 1], [], []>} : vector<8x32xbf16>, vector<32x256xbf16>, vector<8x256xf32> -> vector<8x256xf32>
    %c0_3 = arith.constant 0 : index
    %c0_4 = arith.constant 0 : index
    %4 = vector.load %arg3[%c0_3, %c0_4] : memref<1x256xf32, #tpu.memory_space<vmem>>, vector<1x256xf32>
    %5 = vector.broadcast %4 : vector<1x256xf32> to vector<8x256xf32>
    %6 = arith.addf %3, %5 : vector<8x256xf32>
    %c0_5 = arith.constant 0 : index
    %c0_6 = arith.constant 0 : index
    %7 = vector.load %arg4[%c0_5, %c0_6] : memref<8x256xf32, #tpu.memory_space<vmem>>, vector<8x256xf32>
    tpu.vector_store %arg4[%c0_5, %c0_6], %6 {strides = array<i32>} : memref<8x256xf32, #tpu.memory_space<vmem>>, vector<8x256xf32>,
    return
  }
  func.func @transform_0(%arg0: i32) -> (i32, i32) {
    %c0_i32 = arith.constant 0 : i32
    %c0_i32_0 = arith.constant 0 : i32
    return %arg0, %c0_i32 : i32, i32
  }
  func.func @transform_1(%arg0: i32) -> (i32, i32) {
    %c0_i32 = arith.constant 0 : i32
    %c0_i32_0 = arith.constant 0 : i32
    %c0_i32_1 = arith.constant 0 : i32
    return %c0_i32, %c0_i32_0 : i32, i32
  }
  func.func @transform_2(%arg0: i32) -> (i32, i32) {
    %c0_i32 = arith.constant 0 : i32
    %c0_i32_0 = arith.constant 0 : i32
    %c0_i32_1 = arith.constant 0 : i32
    return %c0_i32, %c0_i32_0 : i32, i32
  }
  func.func @transform_3(%arg0: i32) -> (i32, i32) {
    %c0_i32 = arith.constant 0 : i32
    %c0_i32_0 = arith.constant 0 : i32
    return %arg0, %c0_i32 : i32, i32
  }
}

</mosaic_0001>

<bundles_post_ra>
// kernel: tpu_custom_call.1
= control target key start
LH: loop header
LB: loop body
LE: loop exit
PB: predicated region body
PF: predicated region fallthrough
CT: control target
= control target key end

     0   :  { %8 = vsyncpa [#allocation3], 0  ;;  %s304_s0 = inlined_call_operand.hbm [shape: f32[8,32], index: 0, kind: input, shape index: {}]   ;;  %s305_s1 = inlined_call_operand.hbm [shape: bf16[32,256], index: 1, kind: input, shape index: {}]   ;;  %s306_s2 = inlined_call_operand.vmem [shape: f32[1,256], index: 2, kind: input, shape index: {}]   ;;  %s307_s3 = inlined_call_operand.hbm [shape: f32[8,256], index: 3, kind: output, shape index: {}]  }
   0x1   :  { %9 = vsyncpa [#allocation6], 0 }
   0x2   :  { %10 = vsyncpa [#allocation4], 0  ;;  %s232_s12 = smov [#allocation2]   ;;  %s233_s14 = smov [#allocation5]  }
   0x3   :  { %s17_s13 = sshll.u32 %s232_s12, 4  ;;  %s26_s15 = sshll.u32 %s233_s14, 4  ;;  %s18_s13 = int_to_ptr.vmem [resolvable:$true] %s17_s13  ;;  %s258_s15 = int_to_ptr.vmem [resolvable:$true] %s26_s15 }
   0x4   :  { %s160_s18 = scalar_lea.hbm %s304_s0, 128 }
   0x5   :  { %p161_p0 = scmp.ne.s32.totalorder %s304_s0, %s160_s18  ;;  %p164_p1 = scmp.lt.u32.totalorder %s160_s18, %s304_s0 }
   0x7   :  { %p166_p2 = pnand %p164_p1, %p161_p0 }
   0x9   :  { %169 = shalt.err (!%p166_p2)
}
   0xa   :  { %s170_s23 = scalar_lea.vmem %s18_s13, 128  ;;  %p175_p4 = scmp.lt.s32.totalorder %s18_s13, %s18_s13 }
   0xb   :  { %p171_p3 = scmp.ne.s32.totalorder %s18_s13, %s170_s23  ;;  %p176_p5 = scmp.lt.s32.totalorder %s170_s23, %s170_s23 }
   0xd   :  { %p177_p6 = por %p176_p5, %p175_p4 }
   0xf   :  { %p178_p7 = pnand %p177_p6, %p171_p3 }
  0x11   :  { %181 = shalt.err (!%p178_p7)
}
  0x12   :  { %20 = dma.hbm_to_vmem [thread:$0]  %s304_s0, 128, %s18_s13, [#allocation3]  }
  0x13   :  { %s182_s28 = scalar_lea.hbm %s305_s1, 512 }
  0x14   :  { %p183_p8 = scmp.ne.s32.totalorder %s305_s1, %s182_s28  ;;  %p186_p9 = scmp.lt.u32.totalorder %s182_s28, %s305_s1 }
  0x16   :  { %p188_p10 = pnand %p186_p9, %p183_p8 }
  0x18   :  { %191 = shalt.err (!%p188_p10)
}
  0x19   :  { %s192_s6 = scalar_lea.vmem %s258_s15, 512  ;;  %p197_p12 = scmp.lt.s32.totalorder %s258_s15, %s258_s15 }
  0x1a   :  { %p193_p11 = scmp.ne.s32.totalorder %s258_s15, %s192_s6  ;;  %p198_p13 = scmp.lt.s32.totalorder %s192_s6, %s192_s6 }
  0x1c   :  { %p199_p0 = por %p198_p13, %p197_p12 }
  0x1e   :  { %p200_p1 = pnand %p199_p0, %p193_p11 }
  0x20   :  { %203 = shalt.err (!%p200_p1)
}
  0x21   :  { %s234_s0 = smov 128   ;;  %s235_s7 = smov 8  }
  0x22   :  { %32 = dma.hbm_to_vmem [thread:$0]  %s305_s1, 512, %s258_s15, [#allocation6], %s234_s0, %s234_s0, %s235_s7  }
  0x23   :  { %226 = dma.done.wait [#allocation3], 128  }
  0x24   :  { %227 = vsyncadd [#allocation3], 4294967168 }
  0x25   :  { %228 = dma.done.wait [#allocation6], 512  }
  0x26   :  { %229 = vsyncadd [#allocation6], 4294966784  ;;  %v236_v0 = vmov 0   ;;  %v154_v1 = vld [vmem:[#allocation5 + $0x4] ss:$8 sps:$4 sm:$0xff]   ;;  %v42_v5 = vld [vmem:[#allocation2] sm:$0xff]  ;;  %v50_v7 = vlaneseq }
  0x27   :  { %116 = vmatprep.mubr.bf16.mxu0 %v236_v0  ;;  %v156_v2 = vld [vmem:[#allocation5] ss:$8 sps:$4 sm:$0xff]   ;;  %84 = vmatprep.subr.bf16.mxu0 %v154_v1  ;;  %v157_v3 = vld [vmem:[#allocation5 + $0x14] ss:$8 sps:$4 sm:$0xff]   ;;  %v159_v4 = vld [vmem:[#allocation5 + $0x10] ss:$8 sps:$4 sm:$0xff]   ;;  %v43_v6 = vpack.c.bf16 %v42_v5, %v42_v5 }
  0x28   :  { %85 = vmatpush1.bf16.msra.mxu0 %v156_v2  ;;  %vm80_vm0 = vcmask 261120   ;;  %v51_v8 = vshrl.u32 %v50_v7, 7  ;;  %v48_v10 = vld [vmem:[%s306_s2] sm:$0x3]  ;;  %s237_s11 = smov [#allocation7]  }
  0x29   :  { %86 = vmatprep.subr.bf16.mxu0 %v157_v3  ;;  %s133_s12 = sshll.u32 %s237_s11, 4  ;;  %s134_s12 = int_to_ptr.vmem [resolvable:$true] %s133_s12 }
  0x2a   :  { %v52_v9 = vsub.s32 0, %v51_v8  ;;  %v56_v11 = vsub.s32 1, %v51_v8  ;;  %s204_s13 = scalar_lea.vmem %s134_s12, 256  ;;  %p209_p3 = scmp.lt.s32.totalorder %s134_s12, %s134_s12 }
  0x2b   :  { %p205_p2 = scmp.ne.s32.totalorder %s134_s12, %s204_s13  ;;  %p210_p4 = scmp.lt.s32.totalorder %s204_s13, %s204_s13 }
  0x2c   :  { %87 = vmatpush1.bf16.msra.mxu0 %v159_v4  ;;  %v53_v12 = vrot.slane %v48_v10, %v52_v9  ;;  %v57_v13 = vrot.slane %v48_v10, %v56_v11 }
  0x2d   :  { %p211_p5 = por %p210_p4, %p209_p3 }
  0x2f   :  { %147 = vmatmul.mubr.msk.bf16.vlgmr.msra.gmra.mrb[0].mxu0 %vm80_vm0, %v43_v6  ;;  %p212_p6 = pnand %p211_p5, %p205_p2 }
 0x102   :  { %v118_v14 = vpop.f32.mrb[0].mxu0 }
 0x103   :  { %v119_v15 = vadd.f32 %v118_v14, %v53_v12  ;;  %v120_v16 = vpop.f32.mrb[1].mxu0 }
 0x104   :  { %v121_v17 = vadd.f32 %v120_v16, %v57_v13  ;;  %v122_v18 = vpop.f32.mrb[2].mxu0 }
 0x105   :  { %125 = vst [vmem:[#allocation7] sm:$0xff] %v119_v15  ;;  %v123_v19 = vpop.f32.mrb[3].mxu0 }
 0x106   :  { %126 = vst [vmem:[#allocation7 + $0x8] sm:$0xff] %v121_v17 }
 0x107   :  { %215 = shalt.err (!%p212_p6)
}
 0x108   :  { %s216_s15 = scalar_lea.hbm %s307_s3, 256 }
 0x109   :  { %p217_p7 = scmp.ne.s32.totalorder %s307_s3, %s216_s15  ;;  %p220_p8 = scmp.lt.u32.totalorder %s216_s15, %s307_s3 }
 0x10b   :  { %p222_p9 = pnand %p220_p8, %p217_p7 }
 0x10d   :  { %225 = shalt.err (!%p222_p9)
}
 0x10e   :  { %136 = dma.vmem_to_hbm [thread:$0]  %s134_s12, 256, %s307_s3, [#allocation4]  }
 0x10f   :  { %230 = dma.done.wait [#allocation4], 256  }
 0x110   :  { %231 = vsyncadd [#allocation4], 4294967040 }
 0x111   :  { %140 = vsyncpa [#allocation3], 1 }
 0x112   :  { %141 = vsyncpa [#allocation6], 1 }
 0x113   :  { %142 = vsyncpa [#allocation4], 1 }

</bundles_post_ra>
